<compile_context>
chip_gen: v5e
topology: v5e:2x2
jax: 0.10.0
libtpu: 0.0.40
codegen_flags: <defaults>
</compile_context>

<pallas_src>
import functools

import jax
import jax.numpy as jnp
from jax.experimental import pallas as pl
from jax.experimental.pallas import tpu as pltpu

# ----- module hyper-parameters (Epinet.__init__ args) -----
INPUT_DIM = 16
INDEX_DIM = 8
OUTPUT_DIM = 4
NUM_INDICES = 8
BATCH = 2
EPI_HIDDENS = [32]      # epinet hidden dims (Linear+ReLU, final Linear)
PRIOR_HIDDENS = [16]    # priornet hidden dims (per ensemble member)
PRIOR_SCALE = 0.3

LANES = 128             # TPU lane width
FUSED = 2 * LANES       # fused (epinet | priornet) lane width = 256
BATCH_TILE = 2          # x rows per grid step (toy: full batch -> grid=(1,))


# --------------------------------------------------------------------------
# Kernel
# --------------------------------------------------------------------------
def _epinet_kernel(x_ref, z_ref, p_ref, out_ref, *, offs, bt):
    """x (bt, Kx) [with ones column], z (NI, I), packed params (R, 256).

    Output block: (bt * NI, 128) f32, lanes >= OUTPUT_DIM are zero.
    """
    f32 = jnp.float32

    def blk(name):
        r0, nrows, ncols = offs[name]          # static python ints
        return p_ref[r0:r0 + nrows, :ncols]    # aligned static slice

    x = x_ref[...]                             # (bt, Kx)
    z = z_ref[...]                             # (NI, I)

    # layer 0 (fused epi | prior), biases folded via the ones column of x.
    hx = jnp.dot(x, blk("w0x"), preferred_element_type=f32)    # (bt, 256)
    hz = jnp.dot(z, blk("w0z"), preferred_element_type=f32)    # (NI, 256)
    zz = jnp.dot(z, blk("zmat"), preferred_element_type=f32)   # (NI, 256)

    # cartesian-product combine in VMEM: row (b, i) = hx[b] + hz[i].
    if bt == 1:
        h0 = hx + hz
        zb = zz
    else:
        h0 = jnp.concatenate([hx[b:b + 1, :] + hz for b in range(bt)], axis=0)
        zb = jnp.concatenate([zz] * bt, axis=0)

    h0 = jnp.maximum(h0, 0.0)                  # ReLU (BIAS_LANE stays 1.0)

    # layer 1 (block-diagonal, biases folded via BIAS_LANE of h0).
    h1 = jnp.dot(h0, blk("w1"), preferred_element_type=f32)    # (bt*NI, 256)

    # fused selection: [sel_e ; PRIOR_SCALE*sel_p] -> epi + prior_scale*prior.
    out_ref[...] = jnp.dot(h1 * zb, blk("sel"), preferred_element_type=f32)


# --------------------------------------------------------------------------
# Parameter construction (same shapes as the PyTorch module)
# --------------------------------------------------------------------------
def init_params(key):
    params = {"epi": [], "prior": []}
    dims_e = [INPUT_DIM + INDEX_DIM] + EPI_HIDDENS + [INDEX_DIM * OUTPUT_DIM]
    for l in range(len(dims_e) - 1):
        key, k1 = jax.random.split(key)
        w = (jax.random.normal(k1, (dims_e[l], dims_e[l + 1]), jnp.float32)
             / jnp.sqrt(dims_e[l]))
        b = jnp.full((1, dims_e[l + 1]), 0.01, jnp.float32)
        params["epi"].append((w, b))
    dims_p = [INPUT_DIM] + PRIOR_HIDDENS + [OUTPUT_DIM]
    for l in range(len(dims_p) - 1):
        key, k1 = jax.random.split(key)
        # stacked over the index_dim ensemble members (torch.func.stack_module_state)
        w = (jax.random.normal(k1, (INDEX_DIM, dims_p[l], dims_p[l + 1]), jnp.float32)
             / jnp.sqrt(dims_p[l]))
        b = jnp.full((INDEX_DIM, 1, dims_p[l + 1]), 0.01, jnp.float32)
        params["prior"].append((w, b))
    return params


# --------------------------------------------------------------------------
# Packing: fuse epinet+priornet into 256-lane blocks, fold biases & scale,
# precompute replication/selection matrices.  One (R, 256) f32 slab.
# --------------------------------------------------------------------------
def pack_params(params):
    D, I, OD = INPUT_DIM, INDEX_DIM, OUTPUT_DIM
    H_E, H_P = EPI_HIDDENS[0], PRIOR_HIDDENS[0]
    L, W = LANES, FUSED

    assert len(params["epi"]) == 2 and len(params["prior"]) == 2, \
        "fused packing implemented for a single hidden layer per net"
    assert H_E <= L and I * H_P <= L and I * OD <= L

    ew0, eb0 = params["epi"][0]      # (D+I, H_E), (1, H_E)
    ew1, eb1 = params["epi"][1]      # (H_E, I*OD), (1, I*OD)
    pw0, pb0 = params["prior"][0]    # (I, D, H_P), (I, 1, H_P)
    pw1, pb1 = params["prior"][1]    # (I, H_P, OD), (I, 1, OD)

    bias_lane = L - 1                          # constant-1 lane carried thru ReLU
    assert bias_lane >= max(H_E, I * OD)

    # --- fused layer 0, x half: (D+1, 256); row D is the bias row (ones col) ---
    w0x = jnp.zeros((D + 1, W), jnp.float32)
    w0x = w0x.at[:D, :H_E].set(ew0[:D])
    w0x = w0x.at[:D, L:L + I * H_P].set(jnp.concatenate(list(pw0), axis=1))
    w0x = w0x.at[D, :H_E].set(eb0[0])
    w0x = w0x.at[D, L:L + I * H_P].set(jnp.concatenate(list(pb0), axis=1)[0])
    w0x = w0x.at[D, bias_lane].set(1.0)        # keeps a constant 1 in h0

    # --- fused layer 0, z half: (I, 256) (priornet does not consume z) ---
    w0z = jnp.zeros((I, W), jnp.float32)
    w0z = w0z.at[:, :H_E].set(ew0[D:])

    # --- fused layer 1: (256, 256) block-diagonal; row bias_lane = fused biases ---
    w1 = jnp.zeros((W, W), jnp.float32)
    w1 = w1.at[:H_E, :I * OD].set(ew1)
    w1 = w1.at[L:L + I * H_P, L:L + I * OD].set(
        jax.scipy.linalg.block_diag(*list(pw1)))
    w1 = w1.at[bias_lane, :I * OD].set(eb1[0])
    w1 = w1.at[bias_lane, L:L + I * OD].set(jnp.concatenate(list(pb1), axis=1)[0])

    # --- fused z-replication matrix [rep_e | rep_p]: (I, 256) ---
    m = jnp.arange(I * OD)
    zmat = jnp.zeros((I, W), jnp.float32)
    zmat = zmat.at[m % I, m].set(1.0)          # epinet: flat col m = j*I + k
    zmat = zmat.at[m // OD, L + m].set(1.0)    # priornet: flat col m = member*OD + j

    # --- fused selection [sel_e ; PRIOR_SCALE*sel_p]: (256, 128) ---
    sel = jnp.zeros((W, L), jnp.float32)
    sel = sel.at[m, m // I].set(1.0)
    sel = sel.at[L + m, m % OD].set(PRIOR_SCALE)

    # --- pack into one (R, 256) slab, every block 8-row aligned ---
    def pad_to(a, rows, cols):
        r, c = a.shape
        return jnp.pad(a, ((0, rows - r), (0, cols - c)))

    blocks, offs, parts, row = [("w0x", w0x), ("w0z", w0z), ("w1", w1),
                                ("zmat", zmat), ("sel", sel)], {}, [], 0
    for name, a in blocks:
        r, c = a.shape
        rp = -(-r // 8) * 8
        offs[name] = (row, rp, c)              # (row offset, padded rows, lanes)
        parts.append(pad_to(a, rp, W))
        row += rp
    return jnp.concatenate(parts, axis=0), offs


# --------------------------------------------------------------------------
# Forward wrapper
# --------------------------------------------------------------------------
def epinet_forward(x, z, packed, offs, *, batch_tile=BATCH_TILE):
    B, D = x.shape
    NI, I = z.shape
    N = B * NI
    assert B % batch_tile == 0
    bt = batch_tile
    R = packed.shape[0]

    # ones column activates the layer-0 bias row; zero-pad to the packed K.
    xa_cols = offs["w0x"][1]
    x_aug = jnp.concatenate(
        [x, jnp.ones((B, 1), x.dtype), jnp.zeros((B, xa_cols - D - 1), x.dtype)],
        axis=1)

    kernel = functools.partial(_epinet_kernel, offs=offs, bt=bt)

    out_full = pl.pallas_call(
        kernel,
        out_shape=jax.ShapeDtypeStruct((N, LANES), jnp.float32),
        grid=(B // bt,),
        in_specs=[
            pl.BlockSpec((bt, xa_cols), lambda i: (i, 0)),     # x rows for this step
            pl.BlockSpec((NI, I), lambda i: (0, 0)),           # z: VMEM-resident
            pl.BlockSpec((R, FUSED), lambda i: (0, 0)),        # params: VMEM-resident
        ],
        out_specs=pl.BlockSpec((bt * NI, LANES), lambda i: (i, 0)),
        compiler_params=pltpu.CompilerParams(
            dimension_semantics=("parallel",)),
    )(x_aug, z, packed)
    # lane-dense store in-kernel; trim padding lanes here (or return padded
    # buffer / fuse the consumer at large N to avoid the re-read).
    return out_full[:, :OUTPUT_DIM]


# --------------------------------------------------------------------------
# Pure-JAX mirror of the PyTorch forward for verification
# --------------------------------------------------------------------------
def reference(x, z, params):
    B, D = x.shape
    NI, I = z.shape
    x_c = jnp.repeat(x, NI, axis=0)
    z_c = jnp.tile(z, (B, 1))
    xz = jnp.concatenate([x_c, z_c], axis=1)

    h = xz
    L = len(params["epi"])
    for l, (w, b) in enumerate(params["epi"]):
        h = h @ w + b
        if l < L - 1:
            h = jax.nn.relu(h)
    e = h.reshape(B * NI, OUTPUT_DIM, I)
    epi = jnp.einsum("ijk,ik->ij", e, z_c)

    M = len(params["prior"])
    outs = []
    for m in range(I):
        ph = x_c
        for l, (w, b) in enumerate(params["prior"]):
            ph = ph @ w[m] + b[m]
            if l < M - 1:
                ph = jax.nn.relu(ph)
        outs.append(ph)
    outs = jnp.stack(outs, axis=0)                    # (I, N, OD)
    prior = jnp.einsum("ijk,ji->jk", outs, z_c)
    return epi + PRIOR_SCALE * prior


if __name__ == "__main__":
    key = jax.random.PRNGKey(0)
    kx, kz, kp = jax.random.split(key, 3)
    x = jax.random.normal(kx, (BATCH, INPUT_DIM), jnp.float32)
    z = jax.random.normal(kz, (NUM_INDICES, INDEX_DIM), jnp.float32)
    params = init_params(kp)
    packed, offs = pack_params(params)

    out = epinet_forward(x, z, packed, offs)
    jax.block_until_ready(out)

    ref = reference(x, z, params)
    assert out.shape == (BATCH * NUM_INDICES, OUTPUT_DIM)
    assert jnp.allclose(out, ref, atol=1e-4, rtol=1e-4)
    print("KERNEL_OK")
</pallas_src>

<mosaic_0001>
module attributes {stable_mosaic.version = 11 : i64} {
  func.func @_epinet_kernel(%arg0: i32, %arg1: memref<2x24xf32, #tpu.memory_space<vmem>>, %arg2: memref<8x8xf32, #tpu.memory_space<vmem>>, %arg3: memref<552x256xf32, #tpu.memory_space<vmem>>, %arg4: memref<16x128xf32, #tpu.memory_space<vmem>>) attributes {dimension_semantics = [#tpu.dimension_semantics<parallel>], iteration_bounds = array<i64: 1>, scalar_prefetch = 0 : i64, scratch_operands = 0 : i64, tpu.core_type = #tpu.core_type<tc>, window_params = [{transform_indices = @transform_0, window_bounds = array<i64: 2, 24>}, {pipeline_mode = #tpu.pipeline_mode<synchronous>, transform_indices = @transform_1, window_bounds = array<i64: 8, 8>}, {pipeline_mode = #tpu.pipeline_mode<synchronous>, transform_indices = @transform_2, window_bounds = array<i64: 552, 256>}, {transform_indices = @transform_3, window_bounds = array<i64: 16, 128>}]} {
    %c0 = arith.constant 0 : index
    %c0_0 = arith.constant 0 : index
    %0 = vector.load %arg1[%c0, %c0_0] : memref<2x24xf32, #tpu.memory_space<vmem>>, vector<2x24xf32>
    %c0_1 = arith.constant 0 : index
    %c0_2 = arith.constant 0 : index
    %1 = vector.load %arg2[%c0_1, %c0_2] : memref<8x8xf32, #tpu.memory_space<vmem>>, vector<8x8xf32>
    %c0_3 = arith.constant 0 : index
    %c0_4 = arith.constant 0 : index
    %2 = vector.load %arg3[%c0_3, %c0_4] : memref<552x256xf32, #tpu.memory_space<vmem>>, vector<24x256xf32>
    %cst = arith.constant dense<0.000000e+00> : vector<2x256xf32>
    %3 = tpu.matmul %0, %2, %cst {dimension_numbers = #tpu.dot_dimension_numbers<[1], [0], [0], [1], [0, 0, 1, 1], [], []>} : vector<2x24xf32>, vector<24x256xf32>, vector<2x256xf32> -> vector<2x256xf32>
    %c24 = arith.constant 24 : index
    %c0_5 = arith.constant 0 : index
    %4 = vector.load %arg3[%c24, %c0_5] : memref<552x256xf32, #tpu.memory_space<vmem>>, vector<8x256xf32>
    %cst_6 = arith.constant dense<0.000000e+00> : vector<8x256xf32>
    %5 = tpu.matmul %1, %4, %cst_6 {dimension_numbers = #tpu.dot_dimension_numbers<[1], [0], [0], [1], [0, 0, 1, 1], [], []>} : vector<8x8xf32>, vector<8x256xf32>, vector<8x256xf32> -> vector<8x256xf32>
    %c288 = arith.constant 288 : index
    %c0_7 = arith.constant 0 : index
    %6 = vector.load %arg3[%c288, %c0_7] : memref<552x256xf32, #tpu.memory_space<vmem>>, vector<8x256xf32>
    %cst_8 = arith.constant dense<0.000000e+00> : vector<8x256xf32>
    %7 = tpu.matmul %1, %6, %cst_8 {dimension_numbers = #tpu.dot_dimension_numbers<[1], [0], [0], [1], [0, 0, 1, 1], [], []>} : vector<8x8xf32>, vector<8x256xf32>, vector<8x256xf32> -> vector<8x256xf32>
    %8 = vector.extract_strided_slice %3 {offsets = [0, 0], sizes = [1, 256], strides = [1, 1]} : vector<2x256xf32> to vector<1x256xf32>
    %9 = vector.broadcast %8 : vector<1x256xf32> to vector<8x256xf32>
    %10 = arith.addf %9, %5 : vector<8x256xf32>
    %11 = vector.extract_strided_slice %3 {offsets = [1, 0], sizes = [1, 256], strides = [1, 1]} : vector<2x256xf32> to vector<1x256xf32>
    %12 = vector.broadcast %11 : vector<1x256xf32> to vector<8x256xf32>
    %13 = arith.addf %12, %5 : vector<8x256xf32>
    %14 = tpu.concatenate %10, %13 in 0 : vector<8x256xf32>, vector<8x256xf32> -> vector<16x256xf32>
    %15 = tpu.concatenate %7, %7 in 0 : vector<8x256xf32>, vector<8x256xf32> -> vector<16x256xf32>
    %cst_9 = arith.constant 0.000000e+00 : f32
    %16 = vector.broadcast %cst_9 : f32 to vector<16x256xf32>
    %17 = arith.maximumf %14, %16 : vector<16x256xf32>
    %c32 = arith.constant 32 : index
    %c0_10 = arith.constant 0 : index
    %18 = vector.load %arg3[%c32, %c0_10] : memref<552x256xf32, #tpu.memory_space<vmem>>, vector<256x256xf32>
    %cst_11 = arith.constant dense<0.000000e+00> : vector<16x256xf32>
    %19 = tpu.matmul %17, %18, %cst_11 {dimension_numbers = #tpu.dot_dimension_numbers<[1], [0], [0], [1], [0, 0, 1, 1], [], []>} : vector<16x256xf32>, vector<256x256xf32>, vector<16x256xf32> -> vector<16x256xf32>
    %20 = arith.mulf %19, %15 : vector<16x256xf32>
    %c296 = arith.constant 296 : index
    %c0_12 = arith.constant 0 : index
    %21 = vector.load %arg3[%c296, %c0_12] : memref<552x256xf32, #tpu.memory_space<vmem>>, vector<256x128xf32>
    %cst_13 = arith.constant dense<0.000000e+00> : vector<16x128xf32>
    %22 = tpu.matmul %20, %21, %cst_13 {dimension_numbers = #tpu.dot_dimension_numbers<[1], [0], [0], [1], [0, 0, 1, 1], [], []>} : vector<16x256xf32>, vector<256x128xf32>, vector<16x128xf32> -> vector<16x128xf32>
    %c0_14 = arith.constant 0 : index
    %c0_15 = arith.constant 0 : index
    %23 = vector.load %arg4[%c0_14, %c0_15] : memref<16x128xf32, #tpu.memory_space<vmem>>, vector<16x128xf32>
    tpu.vector_store %arg4[%c0_14, %c0_15], %22 {strides = array<i32>} : memref<16x128xf32, #tpu.memory_space<vmem>>, vector<16x128xf32>,
    return
  }
  func.func @transform_0(%arg0: i32) -> (i32, i32) {
    %c0_i32 = arith.constant 0 : i32
    %c0_i32_0 = arith.constant 0 : i32
    return %arg0, %c0_i32 : i32, i32
  }
  func.func @transform_1(%arg0: i32) -> (i32, i32) {
    %c0_i32 = arith.constant 0 : i32
    %c0_i32_0 = arith.constant 0 : i32
    %c0_i32_1 = arith.constant 0 : i32
    return %c0_i32, %c0_i32_0 : i32, i32
  }
  func.func @transform_2(%arg0: i32) -> (i32, i32) {
    %c0_i32 = arith.constant 0 : i32
    %c0_i32_0 = arith.constant 0 : i32
    %c0_i32_1 = arith.constant 0 : i32
    return %c0_i32, %c0_i32_0 : i32, i32
  }
  func.func @transform_3(%arg0: i32) -> (i32, i32) {
    %c0_i32 = arith.constant 0 : i32
    %c0_i32_0 = arith.constant 0 : i32
    return %arg0, %c0_i32 : i32, i32
  }
}

</mosaic_0001>

<bundles_post_ra>
// kernel: tpu_custom_call.1
= control target key start
LH: loop header
LB: loop body
LE: loop exit
PB: predicated region body
PF: predicated region fallthrough
CT: control target
= control target key end

     0   :  { %8 = vsyncpa [#allocation3], 0  ;;  %s636_s0 = inlined_call_operand.hbm [shape: f32[2,24], index: 0, kind: input, shape index: {}]   ;;  %s637_s1 = inlined_call_operand.hbm [shape: f32[8,8], index: 1, kind: input, shape index: {}]   ;;  %s638_s2 = inlined_call_operand.hbm [shape: f32[552,256], index: 2, kind: input, shape index: {}]   ;;  %s639_s3 = inlined_call_operand.hbm [shape: f32[16,128], index: 3, kind: output, shape index: {}]  }
   0x1   :  { %9 = vsyncpa [#allocation6], 0  ;;  %s27_s14 = sshll.u32 %s637_s1, 4  ;;  %s28_s14 = int_to_ptr.hbm [resolvable:$true] %s27_s14 }
   0x2   :  { %10 = vsyncpa [#allocation4], 0  ;;  %s586_s15 = smov [#allocation5]   ;;  %s16_s19 = sshll.u32 %s636_s0, 4  ;;  %s17_s19 = int_to_ptr.hbm [resolvable:$true] %s16_s19 }
   0x3   :  { %s29_s16 = sshll.u32 %s586_s15, 4  ;;  %s587_s20 = smov [#allocation2]   ;;  %s30_s16 = int_to_ptr.vmem [resolvable:$true] %s29_s16 }
   0x4   :  { %32 = dma.hbm_to_vmem [thread:$0]  %s28_s14, 128, %s30_s16, [#allocation6]  }
   0x5   :  { %s18_s21 = sshll.u32 %s587_s20, 4  ;;  %s37_s24 = sshll.u32 %s638_s2, 4  ;;  %s19_s21 = int_to_ptr.vmem [resolvable:$true] %s18_s21  ;;  %s38_s24 = int_to_ptr.hbm [resolvable:$true] %s37_s24 }
   0x6   :  { %21 = dma.hbm_to_vmem [thread:$0]  %s17_s19, 32, %s19_s21, [#allocation3]  }
   0x7   :  { %s588_s1 = smov [#allocation7]   ;;  %s589_s26 = smov 256  }
   0x8   :  { %s39_s25 = sshll.u32 %s588_s1, 4  ;;  %s590_s27 = smov 16   ;;  %s40_s25 = int_to_ptr.vmem [resolvable:$true] %s39_s25 }
   0x9   :  { %45 = dma.hbm_to_vmem [thread:$0]  %s38_s24, 17664, %s40_s25, [#allocation6], %s589_s26, %s589_s26, %s590_s27  }
   0xa   :  { %580 = dma.done.wait [#allocation3], 32  }
   0xb   :  { %581 = vsyncadd [#allocation3], 4294967264 }
   0xc   :  { %582 = dma.done.wait [#allocation6], 17792  }
   0xd   :  { %583 = vsyncadd [#allocation6], 4294949504  ;;  %v64_v0 = vld [vmem:[#allocation7 + $0x20] sm:$0xff]  ;;  %v65_v1 = vld [vmem:[#allocation7 + $0x28] sm:$0xff]  ;;  %vm66_vm0 = vcmask 195584   ;;  %vm112_vm1 = vcmask 64512  }
   0xe   :  { %v62_v2 = vld [vmem:[#allocation7 + $0x10] sm:$0xff]  ;;  %83 = vmatpush.msra.mxu2 %v64_v0  ;;  %103 = vmatpush.msra.mxu3 %v65_v1  ;;  %v63_v3 = vld [vmem:[#allocation7 + $0x18] sm:$0xff]  ;;  %v60_v4 = vld [vmem:[#allocation7] sm:$0xff]  ;;  %s591_s0 = smov [#allocation8]   ;;  %s456_s30 = sshll.u32 %s639_s3, 4  ;;  %s457_s30 = int_to_ptr.hbm [resolvable:$true] %s456_s30 }
   0xf   :  { %v61_v5 = vld [vmem:[#allocation7 + $0x8] sm:$0xff]  ;;  %v58_v6 = vld [vmem:[#allocation2] sm:$0x3]  ;;  %v111_v8 = vld [vmem:[#allocation7 + $0x38] sm:$0xff]  ;;  %s454_s2 = sshll.u32 %s591_s0, 4  ;;  %s592_s4 = smov 128   ;;  %s455_s2 = int_to_ptr.vmem [resolvable:$true] %s454_s2 }
  0x10   :  { %84 = vmatpush.msra.mxu2 %v62_v2  ;;  %104 = vmatpush.msra.mxu3 %v63_v3  ;;  %v110_v7 = vld [vmem:[#allocation7 + $0x30] sm:$0xff]  ;;  %v156_v9 = vld [vmem:[#allocation7 + $0x240] sm:$0xff]  ;;  %v157_v10 = vld [vmem:[#allocation7 + $0x248] sm:$0xff]  ;;  %s593_s5 = smov 8  }
  0x11   :  { %v240_v11 = vld [vmem:[#allocation7 + $0x130] sm:$0xff]  ;;  %v238_v13 = vld [vmem:[#allocation7 + $0x120] sm:$0xff]  ;;  %v623_v17 = vld [vmem:[#allocation5] sm:$0xff] }
  0x12   :  { %85 = vmatpush.msra.mxu2 %v60_v4  ;;  %105 = vmatpush.msra.mxu3 %v61_v5  ;;  %v272_v12 = vld [vmem:[#allocation7 + $0x230] sm:$0xff]  ;;  %v270_v14 = vld [vmem:[#allocation7 + $0x220] sm:$0xff]  ;;  %v241_v18 = vld [vmem:[#allocation7 + $0x138] sm:$0xff] }
  0x13   :  { %470 = vmatmul.msk.f32.vlgmr.msra.gmra.mxu2 %vm66_vm0, %v58_v6  ;;  %471 = vmatmul.msk.f32.vlgmr.msra.gmra.mxu3 %vm66_vm0, %v58_v6  ;;  %v236_v15 = vld [vmem:[#allocation7 + $0x110] sm:$0xff]  ;;  %v273_v19 = vld [vmem:[#allocation7 + $0x238] sm:$0xff]  ;;  %v234_v20 = vld [vmem:[#allocation7 + $0x100] sm:$0xff] }
  0x14   :  { %131 = vmatpush.msrb.mxu2 %v110_v7  ;;  %151 = vmatpush.msrb.mxu3 %v111_v8  ;;  %v268_v16 = vld [vmem:[#allocation7 + $0x210] sm:$0xff]  ;;  %v266_v21 = vld [vmem:[#allocation7 + $0x200] sm:$0xff]  ;;  %v239_v22 = vld [vmem:[#allocation7 + $0x128] sm:$0xff] }
  0x15   :  { %274 = vmatpush.msra.mxu0 %v240_v11  ;;  %297 = vmatpush.msra.mxu1 %v272_v12  ;;  %v271_v23 = vld [vmem:[#allocation7 + $0x228] sm:$0xff]  ;;  %v232_v24 = vld [vmem:[#allocation7 + $0xf0] sm:$0xff]  ;;  %v237_v26 = vld [vmem:[#allocation7 + $0x118] sm:$0xff] }
  0x16   :  { %173 = vmatpush.msra.mxu2 %v156_v9  ;;  %193 = vmatpush.msra.mxu3 %v157_v10  ;;  %v264_v25 = vld [vmem:[#allocation7 + $0x1f0] sm:$0xff]  ;;  %v269_v27 = vld [vmem:[#allocation7 + $0x218] sm:$0xff]  ;;  %v230_v28 = vld [vmem:[#allocation7 + $0xe0] sm:$0xff] }
  0x17   :  { %275 = vmatpush.msra.mxu0 %v238_v13  ;;  %298 = vmatpush.msra.mxu1 %v270_v14  ;;  %v262_v29 = vld [vmem:[#allocation7 + $0x1e0] sm:$0xff]  ;;  %v235_v30 = vld [vmem:[#allocation7 + $0x108] sm:$0xff]  ;;  %v228_v32 = vld [vmem:[#allocation7 + $0xd0] sm:$0xff] }
  0x18   :  { %v267_v31 = vld [vmem:[#allocation7 + $0x208] sm:$0xff]  ;;  %v260_v33 = vld [vmem:[#allocation7 + $0x1d0] sm:$0xff]  ;;  %v233_v34 = vld [vmem:[#allocation7 + $0xf8] sm:$0xff] }
  0x19   :  { %276 = vmatpush.msra.mxu0 %v236_v15  ;;  %299 = vmatpush.msra.mxu1 %v268_v16  ;;  %v265_v35 = vld [vmem:[#allocation7 + $0x1f8] sm:$0xff]  ;;  %v226_v36 = vld [vmem:[#allocation7 + $0xc0] sm:$0xff]  ;;  %v231_v38 = vld [vmem:[#allocation7 + $0xe8] sm:$0xff] }
  0x1a   :  { %v258_v37 = vld [vmem:[#allocation7 + $0x1c0] sm:$0xff]  ;;  %v263_v39 = vld [vmem:[#allocation7 + $0x1e8] sm:$0xff]  ;;  %v224_v40 = vld [vmem:[#allocation7 + $0xb0] sm:$0xff] }
  0x1b   :  { %472 = vmatmul.msk.f32.vlgmr.msrb.gmra.mxu2 %vm112_vm1, %v623_v17  ;;  %473 = vmatmul.msk.f32.vlgmr.msrb.gmra.mxu3 %vm112_vm1, %v623_v17  ;;  %v256_v41 = vld [vmem:[#allocation7 + $0x1b0] sm:$0xff]  ;;  %v229_v42 = vld [vmem:[#allocation7 + $0xd8] sm:$0xff]  ;;  %v227_v44 = vld [vmem:[#allocation7 + $0xc8] sm:$0xff] }
  0x1c   :  { %320 = vmatpush.msrb.mxu2 %v241_v18  ;;  %343 = vmatpush.msrb.mxu3 %v273_v19  ;;  %v261_v43 = vld [vmem:[#allocation7 + $0x1d8] sm:$0xff]  ;;  %v259_v45 = vld [vmem:[#allocation7 + $0x1c8] sm:$0xff]  ;;  %v222_v48 = vld [vmem:[#allocation7 + $0xa0] sm:$0xff] }
  0x1d   :  { %277 = vmatpush.msra.mxu0 %v234_v20  ;;  %300 = vmatpush.msra.mxu1 %v266_v21  ;;  %v225_v46 = vld [vmem:[#allocation7 + $0xb8] sm:$0xff]  ;;  %v254_v49 = vld [vmem:[#allocation7 + $0x1a0] sm:$0xff]  ;;  %v223_v50 = vld [vmem:[#allocation7 + $0xa8] sm:$0xff] }
  0x1e   :  { %321 = vmatpush.msrb.mxu2 %v239_v22  ;;  %344 = vmatpush.msrb.mxu3 %v271_v23  ;;  %v257_v47 = vld [vmem:[#allocation7 + $0x1b8] sm:$0xff]  ;;  %v255_v51 = vld [vmem:[#allocation7 + $0x1a8] sm:$0xff]  ;;  %v220_v52 = vld [vmem:[#allocation7 + $0x90] sm:$0xff] }
  0x1f   :  { %278 = vmatpush.msra.mxu0 %v232_v24  ;;  %301 = vmatpush.msra.mxu1 %v264_v25  ;;  %v252_v53 = vld [vmem:[#allocation7 + $0x190] sm:$0xff]  ;;  %v221_v54 = vld [vmem:[#allocation7 + $0x98] sm:$0xff]  ;;  %v218_v56 = vld [vmem:[#allocation7 + $0x80] sm:$0xff] }
  0x20   :  { %322 = vmatpush.msrb.mxu2 %v237_v26  ;;  %345 = vmatpush.msrb.mxu3 %v269_v27  ;;  %v253_v55 = vld [vmem:[#allocation7 + $0x198] sm:$0xff]  ;;  %v250_v57 = vld [vmem:[#allocation7 + $0x180] sm:$0xff]  ;;  %v219_v58 = vld [vmem:[#allocation7 + $0x88] sm:$0xff] }
  0x21   :  { %279 = vmatpush.msra.mxu0 %v230_v28  ;;  %302 = vmatpush.msra.mxu1 %v262_v29  ;;  %v251_v59 = vld [vmem:[#allocation7 + $0x188] sm:$0xff]  ;;  %v216_v60 = vld [vmem:[#allocation7 + $0x70] sm:$0xff]  ;;  %v217_v62 = vld [vmem:[#allocation7 + $0x78] sm:$0xff] }
  0x22   :  { %323 = vmatpush.msrb.mxu2 %v235_v30  ;;  %346 = vmatpush.msrb.mxu3 %v267_v31  ;;  %v248_v61 = vld [vmem:[#allocation7 + $0x170] sm:$0xff]  ;;  %v249_v63 = vld [vmem:[#allocation7 + $0x178] sm:$0xff]  ;;  %v214_v0 = vld [vmem:[#allocation7 + $0x60] sm:$0xff] }
  0x23   :  { %280 = vmatpush.msra.mxu0 %v228_v32  ;;  %303 = vmatpush.msra.mxu1 %v260_v33  ;;  %v246_v1 = vld [vmem:[#allocation7 + $0x160] sm:$0xff]  ;;  %v215_v2 = vld [vmem:[#allocation7 + $0x68] sm:$0xff]  ;;  %v212_v4 = vld [vmem:[#allocation7 + $0x50] sm:$0xff] }
  0x24   :  { %324 = vmatpush.msrb.mxu2 %v233_v34  ;;  %347 = vmatpush.msrb.mxu3 %v265_v35  ;;  %v247_v3 = vld [vmem:[#allocation7 + $0x168] sm:$0xff]  ;;  %v244_v5 = vld [vmem:[#allocation7 + $0x150] sm:$0xff]  ;;  %v213_v6 = vld [vmem:[#allocation7 + $0x58] sm:$0xff] }
  0x25   :  { %281 = vmatpush.msra.mxu0 %v226_v36  ;;  %304 = vmatpush.msra.mxu1 %v258_v37  ;;  %v245_v7 = vld [vmem:[#allocation7 + $0x158] sm:$0xff]  ;;  %v210_v8 = vld [vmem:[#allocation7 + $0x40] sm:$0xff]  ;;  %v211_v10 = vld [vmem:[#allocation7 + $0x48] sm:$0xff] }
  0x26   :  { %325 = vmatpush.msrb.mxu2 %v231_v38  ;;  %348 = vmatpush.msrb.mxu3 %v263_v39  ;;  %v242_v9 = vld [vmem:[#allocation7 + $0x140] sm:$0xff]  ;;  %v243_v11 = vld [vmem:[#allocation7 + $0x148] sm:$0xff]  ;;  %v384_v13 = vld [vmem:[#allocation7 + $0x330] sm:$0xff] }
  0x27   :  { %282 = vmatpush.msra.mxu0 %v224_v40  ;;  %305 = vmatpush.msra.mxu1 %v256_v41  ;;  %v385_v12 = vld [vmem:[#allocation7 + $0x340] sm:$0xff]  ;;  %v400_v16 = vld [vmem:[#allocation7 + $0x430] sm:$0xff] }
  0x28   :  { %326 = vmatpush.msrb.mxu2 %v229_v42  ;;  %349 = vmatpush.msrb.mxu3 %v261_v43  ;;  %v401_v14 = vld [vmem:[#allocation7 + $0x440] sm:$0xff]  ;;  %v382_v18 = vld [vmem:[#allocation7 + $0x310] sm:$0xff] }
  0x29   :  { %474 = vmatmul.msk.f32.vlgmr.msra.gmra.mxu2 %vm112_vm1, %v623_v17  ;;  %475 = vmatmul.msk.f32.vlgmr.msra.gmra.mxu3 %vm112_vm1, %v623_v17  ;;  %v383_v15 = vld [vmem:[#allocation7 + $0x320] sm:$0xff]  ;;  %v398_v19 = vld [vmem:[#allocation7 + $0x410] sm:$0xff] }
  0x2a   :  { %327 = vmatpush.msrb.mxu2 %v227_v44  ;;  %350 = vmatpush.msrb.mxu3 %v259_v45  ;;  %v399_v17 = vld [vmem:[#allocation7 + $0x420] sm:$0xff]  ;;  %v380_v22 = vld [vmem:[#allocation7 + $0x2f0] sm:$0xff] }
  0x2b   :  { %283 = vmatpush.msra.mxu0 %v222_v48  ;;  %306 = vmatpush.msra.mxu1 %v254_v49  ;;  %v381_v20 = vld [vmem:[#allocation7 + $0x300] sm:$0xff]  ;;  %v396_v23 = vld [vmem:[#allocation7 + $0x3f0] sm:$0xff] }
  0x2c   :  { %328 = vmatpush.msrb.mxu2 %v225_v46  ;;  %351 = vmatpush.msrb.mxu3 %v257_v47  ;;  %v397_v21 = vld [vmem:[#allocation7 + $0x400] sm:$0xff]  ;;  %v378_v28 = vld [vmem:[#allocation7 + $0x2d0] sm:$0xff] }
  0x2d   :  { %284 = vmatpush.msra.mxu0 %v220_v52  ;;  %307 = vmatpush.msra.mxu1 %v252_v53  ;;  %v379_v26 = vld [vmem:[#allocation7 + $0x2e0] sm:$0xff]  ;;  %v394_v29 = vld [vmem:[#allocation7 + $0x3d0] sm:$0xff] }
  0x2e   :  { %329 = vmatpush.msrb.mxu2 %v223_v50  ;;  %352 = vmatpush.msrb.mxu3 %v255_v51  ;;  %v395_v27 = vld [vmem:[#allocation7 + $0x3e0] sm:$0xff]  ;;  %v376_v32 = vld [vmem:[#allocation7 + $0x2b0] sm:$0xff] }
  0x2f   :  { %285 = vmatpush.msra.mxu0 %v218_v56  ;;  %308 = vmatpush.msra.mxu1 %v250_v57  ;;  %v377_v30 = vld [vmem:[#allocation7 + $0x2c0] sm:$0xff]  ;;  %v392_v35 = vld [vmem:[#allocation7 + $0x3b0] sm:$0xff] }
  0x30   :  { %330 = vmatpush.msrb.mxu2 %v221_v54  ;;  %353 = vmatpush.msrb.mxu3 %v253_v55  ;;  %v393_v31 = vld [vmem:[#allocation7 + $0x3c0] sm:$0xff]  ;;  %v374_v43 = vld [vmem:[#allocation7 + $0x290] sm:$0xff] }
  0x31   :  { %286 = vmatpush.msra.mxu0 %v216_v60  ;;  %309 = vmatpush.msra.mxu1 %v248_v61  ;;  %v375_v38 = vld [vmem:[#allocation7 + $0x2a0] sm:$0xff]  ;;  %v372_v51 = vld [vmem:[#allocation7 + $0x270] sm:$0xff] }
  0x32   :  { %331 = vmatpush.msrb.mxu2 %v219_v58  ;;  %354 = vmatpush.msrb.mxu3 %v251_v59  ;;  %v373_v46 = vld [vmem:[#allocation7 + $0x280] sm:$0xff]  ;;  %v390_v54 = vld [vmem:[#allocation7 + $0x390] sm:$0xff] }
  0x33   :  { %287 = vmatpush.msra.mxu0 %v214_v0  ;;  %310 = vmatpush.msra.mxu1 %v246_v1  ;;  %v391_v52 = vld [vmem:[#allocation7 + $0x3a0] sm:$0xff]  ;;  %v370_v55 = vld [vmem:[#allocation7 + $0x250] sm:$0xff] }
  0x34   :  { %332 = vmatpush.msrb.mxu2 %v217_v62  ;;  %355 = vmatpush.msrb.mxu3 %v249_v63  ;;  %v371_v53 = vld [vmem:[#allocation7 + $0x260] sm:$0xff]  ;;  %v388_v57 = vld [vmem:[#allocation7 + $0x370] sm:$0xff] }
  0x35   :  { %288 = vmatpush.msra.mxu0 %v212_v4  ;;  %311 = vmatpush.msra.mxu1 %v244_v5  ;;  %v389_v56 = vld [vmem:[#allocation7 + $0x380] sm:$0xff]  ;;  %v386_v59 = vld [vmem:[#allocation7 + $0x350] sm:$0xff] }
  0x36   :  { %333 = vmatpush.msrb.mxu2 %v215_v2  ;;  %356 = vmatpush.msrb.mxu3 %v247_v3  ;;  %v387_v58 = vld [vmem:[#allocation7 + $0x360] sm:$0xff] }
  0x37   :  { %289 = vmatpush.msra.mxu0 %v210_v8  ;;  %312 = vmatpush.msra.mxu1 %v242_v9 }
  0x38   :  { %334 = vmatpush.msrb.mxu2 %v213_v6  ;;  %357 = vmatpush.msrb.mxu3 %v245_v7 }
  0x39   :  { %402 = vmatpush.msrb.mxu0 %v385_v12  ;;  %425 = vmatpush.msrb.mxu1 %v401_v14 }
  0x3a   :  { %335 = vmatpush.msrb.mxu2 %v211_v10  ;;  %358 = vmatpush.msrb.mxu3 %v243_v11 }
  0x3b   :  { %403 = vmatpush.msrb.mxu0 %v384_v13  ;;  %426 = vmatpush.msrb.mxu1 %v400_v16 }
  0x3d   :  { %404 = vmatpush.msrb.mxu0 %v383_v15  ;;  %427 = vmatpush.msrb.mxu1 %v399_v17 }
  0x3f   :  { %405 = vmatpush.msrb.mxu0 %v382_v18  ;;  %428 = vmatpush.msrb.mxu1 %v398_v19 }
  0x41   :  { %406 = vmatpush.msrb.mxu0 %v381_v20  ;;  %429 = vmatpush.msrb.mxu1 %v397_v21 }
  0x43   :  { %407 = vmatpush.msrb.mxu0 %v380_v22  ;;  %430 = vmatpush.msrb.mxu1 %v396_v23 }
  0x45   :  { %408 = vmatpush.msrb.mxu0 %v379_v26  ;;  %431 = vmatpush.msrb.mxu1 %v395_v27 }
  0x47   :  { %409 = vmatpush.msrb.mxu0 %v378_v28  ;;  %432 = vmatpush.msrb.mxu1 %v394_v29 }
  0x49   :  { %410 = vmatpush.msrb.mxu0 %v377_v30  ;;  %433 = vmatpush.msrb.mxu1 %v393_v31 }
  0x4b   :  { %411 = vmatpush.msrb.mxu0 %v376_v32  ;;  %434 = vmatpush.msrb.mxu1 %v392_v35 }
  0x4d   :  { %412 = vmatpush.msrb.mxu0 %v375_v38  ;;  %435 = vmatpush.msrb.mxu1 %v391_v52 }
  0x4f   :  { %413 = vmatpush.msrb.mxu0 %v374_v43  ;;  %436 = vmatpush.msrb.mxu1 %v390_v54 }
  0x51   :  { %414 = vmatpush.msrb.mxu0 %v373_v46  ;;  %437 = vmatpush.msrb.mxu1 %v389_v56 }
  0x53   :  { %415 = vmatpush.msrb.mxu0 %v372_v51  ;;  %438 = vmatpush.msrb.mxu1 %v388_v57 }
  0x55   :  { %416 = vmatpush.msrb.mxu0 %v371_v53  ;;  %439 = vmatpush.msrb.mxu1 %v387_v58 }
  0x57   :  { %417 = vmatpush.msrb.mxu0 %v370_v55  ;;  %440 = vmatpush.msrb.mxu1 %v386_v59 }
  0x96   :  { %v87_v24 = vpop.f32.mrf.mxu2  ;;  %v107_v25 = vpop.f32.mrf.mxu3 }
  0x97   :  { %v198_v33 = vperm.slane %v87_v24, 0  ;;  %v199_v34 = vperm.slane %v107_v25, 0  ;;  %v202_v44 = vperm.slane %v87_v24, 1  ;;  %v203_v45 = vperm.slane %v107_v25, 1 }
  0x9e   :  { %v133_v36 = vpop.f32.mrf.mxu2  ;;  %v153_v37 = vpop.f32.mrf.mxu3 }
  0x9f   :  { %v200_v39 = vadd.f32 %v198_v33, %v133_v36  ;;  %v201_v40 = vadd.f32 %v199_v34, %v153_v37  ;;  %v204_v47 = vadd.f32 %v202_v44, %v133_v36  ;;  %v205_v48 = vadd.f32 %v203_v45, %v153_v37 }
  0xa1   :  { %v206_v41 = vmax.f32 %v200_v39, 0.0  ;;  %v207_v42 = vmax.f32 %v201_v40, 0.0  ;;  %v208_v49 = vmax.f32 %v204_v47, 0.0  ;;  %v209_v50 = vmax.f32 %v205_v48, 0.0 }
  0xa3   :  { %290 = vmatmul.f32.vlgmr.msra.gmra.mxu0 %v206_v41  ;;  %313 = vmatmul.f32.vlgmr.msra.gmra.mxu1 %v207_v42 }
  0xa4   :  { %336 = vmatmul.f32.vlgmr.msrb.gmra.mxu2 %v206_v41  ;;  %359 = vmatmul.f32.vlgmr.msrb.gmra.mxu3 %v207_v42 }
  0xab   :  { %293 = vmatmul.f32.gmra.mxu0 %v208_v49  ;;  %316 = vmatmul.f32.gmra.mxu1 %v209_v50 }
  0xac   :  { %339 = vmatmul.f32.gmra.mxu2 %v208_v49  ;;  %362 = vmatmul.f32.gmra.mxu3 %v209_v50  ;;  %v175_v60 = vpop.f32.mrf.mxu2  ;;  %v195_v61 = vpop.f32.mrf.mxu3 }
 0x120   :  { %v291_v62 = vpop.f32.mrf.mxu0  ;;  %v314_v63 = vpop.f32.mrf.mxu1 }
 0x121   :  { %v315_v0 = vadd.f32 %v314_v63, %v291_v62 }
 0x123   :  { %v366_v1 = vmul.f32 %v315_v0, %v175_v60 }
 0x125   :  { %418 = vmatmul.f32.vlgmr.msrb.gmra.mxu0 %v366_v1 }
 0x127   :  { %v337_v2 = vpop.f32.mrf.mxu2  ;;  %v360_v3 = vpop.f32.mrf.mxu3 }
 0x128   :  { %v361_v4 = vadd.f32 %v360_v3, %v337_v2  ;;  %v294_v5 = vpop.f32.mrf.mxu0  ;;  %v317_v6 = vpop.f32.mrf.mxu1 }
 0x129   :  { %v318_v7 = vadd.f32 %v317_v6, %v294_v5 }
 0x12a   :  { %v367_v8 = vmul.f32 %v361_v4, %v195_v61 }
 0x12b   :  { %v368_v9 = vmul.f32 %v318_v7, %v175_v60 }
 0x12c   :  { %441 = vmatmul.f32.vlgmr.msrb.gmra.mxu1 %v367_v8 }
 0x12d   :  { %421 = vmatmul.f32.gmra.mxu0 %v368_v9 }
 0x12f   :  { %v340_v10 = vpop.f32.mrf.mxu2  ;;  %v363_v11 = vpop.f32.mrf.mxu3 }
 0x130   :  { %v364_v12 = vadd.f32 %v363_v11, %v340_v10 }
 0x132   :  { %v369_v13 = vmul.f32 %v364_v12, %v195_v61 }
 0x134   :  { %444 = vmatmul.f32.gmra.mxu1 %v369_v13 }
 0x1a2   :  { %v419_v14 = vpop.f32.mrf.mxu0 }
 0x1a9   :  { %v442_v15 = vpop.f32.mrf.mxu1 }
 0x1aa   :  { %v443_v16 = vadd.f32 %v442_v15, %v419_v14  ;;  %v422_v17 = vpop.f32.mrf.mxu0 }
 0x1ac   :  { %448 = vst [vmem:[#allocation8] sm:$0xff] %v443_v16 }
 0x1b1   :  { %v445_v18 = vpop.f32.mrf.mxu1 }
 0x1b2   :  { %v446_v19 = vadd.f32 %v445_v18, %v422_v17 }
 0x1b4   :  { %449 = vst [vmem:[#allocation8 + $0x8] sm:$0xff] %v446_v19 }
 0x1b5   :  { %462 = dma.vmem_to_hbm [thread:$0]  %s455_s2, 256, %s457_s30, [#allocation4], %s592_s4, %s592_s4, %s593_s5  }
 0x1b6   :  { %584 = dma.done.wait [#allocation4], 256  }
 0x1b7   :  { %585 = vsyncadd [#allocation4], 4294967040 }
 0x1b8   :  { %467 = vsyncpa [#allocation3], 1 }
 0x1b9   :  { %468 = vsyncpa [#allocation6], 1 }
 0x1ba   :  { %469 = vsyncpa [#allocation4], 1 }

</bundles_post_ra>
